<compile_context>
chip_gen: v6e
topology: v6e:2x2x1
jax: 0.10.0
libtpu: 0.0.40
codegen_flags: <defaults>
</compile_context>

<pallas_src>
import functools

import jax
import jax.numpy as jnp
from jax import lax
from jax.experimental import pallas as pl
from jax.experimental.pallas import tpu as pltpu


def _round_up(x, m):
    return (x + m - 1) // m * m


def _pick_images_per_step(n, max_b=4):
    """Largest B <= max_b dividing N that still leaves >= 2 grid steps."""
    if n <= 1:
        return max(n, 1)
    best = 1
    for b in range(1, min(n, max_b) + 1):
        if n % b == 0 and n // b >= 2:
            best = b
    return best


def _convblock_kernel(x_ref, w1_ref, b1_ref, w2_ref, b2_ref, o_ref, flat_ref,
                      *, H, W, B, Cinp, Cout, Coutp, PAD, FLAT, mxu_dtype):
    """Fused (conv3x3 + folded-BN bias + ReLU) x 2 for B images.

    x_ref    : (B, Cinp, H*W)      inputs, channels (padded to 8) on sublanes
    w1_ref   : (Coutp, 9*Cinp)     BN-folded conv1 weights (im2col layout)
    b1_ref   : (Coutp, 1)          BN-folded conv1 bias
    w2_ref   : (Coutp, 9*Coutp)    BN-folded conv2 weights
    b2_ref   : (Coutp, 1)          BN-folded conv2 bias
    o_ref    : (B, Cout, H*W)      outputs
    flat_ref : (Cmaxp, B*FLAT)     VMEM scratch: per-image zero-haloed flat copy
    """
    HW = H * W
    cmaxp = flat_ref.shape[0]

    # Zero ONLY the halo strips (lane-aligned, 1 vreg-store each); the middle
    # [PAD, PAD+HW) region of every image segment is fully overwritten below.
    for b in range(B):
        base = b * FLAT
        flat_ref[:, base:base + PAD] = jnp.zeros((cmaxp, PAD), jnp.float32)
        flat_ref[:, base + PAD + HW:base + FLAT] = jnp.zeros(
            (cmaxp, FLAT - PAD - HW), jnp.float32)

    # Column-validity masks, built once at full height (no per-tap broadcasts).
    col = lax.broadcasted_iota(jnp.int32, (cmaxp, HW), 1) % W
    mask_l = col > 0            # source column (w-1) is in range
    mask_r = col < (W - 1)      # source column (w+1) is in range

    def conv_bn_relu(c, w_ref, b_ref):
        # Assemble the (9c, B*HW) im2col operand in registers: 9 contiguous
        # lane-slices of the halo'd flat buffer per image, masked for column
        # wrap, concatenated (sublane-aligned chunks since c % 8 == 0).
        per_img = []
        for b in range(B):
            base = b * FLAT + PAD
            taps = []
            for dr in (-1, 0, 1):
                for dc in (-1, 0, 1):
                    start = base + dr * W + dc
                    s = flat_ref[0:c, start:start + HW]          # (c, HW)
                    if dc == -1:
                        s = jnp.where(mask_l[0:c], s, 0.0)
                    elif dc == 1:
                        s = jnp.where(mask_r[0:c], s, 0.0)
                    taps.append(s)
            per_img.append(jnp.concatenate(taps, axis=0))        # (9c, HW)
        patches = (per_img[0] if B == 1
                   else jnp.concatenate(per_img, axis=1))        # (9c, B*HW)
        y = jnp.dot(w_ref[...], patches.astype(mxu_dtype),
                    preferred_element_type=jnp.float32)          # (Coutp, B*HW)
        y = y + b_ref[...]
        return jnp.maximum(y, 0.0)                               # ReLU (f32)

    # ---- stage 1: conv1 + BN1 + ReLU --------------------------------------
    for b in range(B):
        base = b * FLAT + PAD                                    # 128-aligned
        flat_ref[0:Cinp, base:base + HW] = x_ref[b, :, :].astype(jnp.float32)
    z = conv_bn_relu(Cinp, w1_ref, b1_ref)

    # ---- stage 2: conv2 + BN2 + ReLU (intermediate never leaves VMEM) ------
    for b in range(B):
        base = b * FLAT + PAD
        flat_ref[0:Coutp, base:base + HW] = z[:, b * HW:(b + 1) * HW]
    y = conv_bn_relu(Coutp, w2_ref, b2_ref)

    for b in range(B):
        o_ref[b, :, :] = y[0:Cout, b * HW:(b + 1) * HW].astype(o_ref.dtype)


def _fold_bn_pad(w, b, gamma, beta, mean, var, eps, cinp, coutp, w_dtype):
    """Fold eval-mode BN into the conv and pad channels to sublane multiples."""
    cout, cin = w.shape[0], w.shape[1]
    scale = gamma / jnp.sqrt(var + eps)
    w_f = w * scale[:, None, None, None]
    b_f = (b - mean) * scale + beta
    # (o,i,kh,kw) -> (o,kh,kw,i), zero-pad o->coutp and i->cinp, flatten so
    # column (kh*3+kw)*cinp + ci matches the kernel's tap/row ordering.
    w_m = jnp.transpose(w_f, (0, 2, 3, 1))
    w_m = jnp.pad(w_m, ((0, coutp - cout), (0, 0), (0, 0), (0, cinp - cin)))
    w_m = w_m.reshape(coutp, 9 * cinp).astype(w_dtype)
    b_m = jnp.pad(b_f, (0, coutp - cout)).reshape(coutp, 1).astype(jnp.float32)
    return w_m, b_m


def convblock_forward(x, params, eps=1e-5):
    """ConvBlock forward.  x: (N, Cin, H, W) NCHW; returns (N, Cout, H, W)."""
    N, Cin, H, W = x.shape
    HW = H * W
    Cout = params["conv1_w"].shape[0]
    Cinp, Coutp = _round_up(Cin, 8), _round_up(Cout, 8)
    Cmaxp = max(Cinp, Coutp)

    # bf16 MXU operands only matter at realistic channel counts; keep f32 for
    # tiny C so the tight f32 reference tolerance holds.
    mxu_dtype = jnp.bfloat16 if max(Cin, Cout) >= 64 else jnp.float32

    w1m, b1m = _fold_bn_pad(params["conv1_w"], params["conv1_b"], params["bn1_g"],
                            params["bn1_b"], params["bn1_m"], params["bn1_v"],
                            eps, Cinp, Coutp, mxu_dtype)
    w2m, b2m = _fold_bn_pad(params["conv2_w"], params["conv2_b"], params["bn2_g"],
                            params["bn2_b"], params["bn2_m"], params["bn2_v"],
                            eps, Coutp, Coutp, mxu_dtype)

    # (N,C,H,W)->(N,C,HW) is a free reshape of contiguous dims; channel pad to
    # a sublane multiple is a no-op whenever Cin % 8 == 0 (realistic nets).
    x_flat = x.reshape(N, Cin, HW)
    if Cinp != Cin:
        x_flat = jnp.pad(x_flat, ((0, 0), (0, Cinp - Cin), (0, 0)))

    # Fold B images into the matmul's lane dimension; keep >= 2 grid steps so
    # both v7x TensorCores get work (v5e/v6e have a single TC).
    B = _pick_images_per_step(N)
    steps = N // B

    PAD = _round_up(W + 1, 128)                 # 128-lane-aligned halo
    FLAT = _round_up(PAD + HW + PAD, 128)       # per-image segment width

    kernel = functools.partial(_convblock_kernel, H=H, W=W, B=B, Cinp=Cinp,
                               Cout=Cout, Coutp=Coutp, PAD=PAD, FLAT=FLAT,
                               mxu_dtype=mxu_dtype)
    out = pl.pallas_call(
        kernel,
        out_shape=jax.ShapeDtypeStruct((N, Cout, HW), x.dtype),
        grid_spec=pltpu.PrefetchScalarGridSpec(
            num_scalar_prefetch=0,
            grid=(steps,),
            in_specs=[
                pl.BlockSpec((B, Cinp, HW), lambda n: (n, 0, 0)),
                # Constant index maps: weights DMA'd once, resident across grid.
                pl.BlockSpec((Coutp, 9 * Cinp), lambda n: (0, 0)),
                pl.BlockSpec((Coutp, 1), lambda n: (0, 0)),
                pl.BlockSpec((Coutp, 9 * Coutp), lambda n: (0, 0)),
                pl.BlockSpec((Coutp, 1), lambda n: (0, 0)),
            ],
            out_specs=pl.BlockSpec((B, Cout, HW), lambda n: (n, 0, 0)),
            scratch_shapes=[
                pltpu.VMEM((Cmaxp, B * FLAT), jnp.float32),
            ],
        ),
        compiler_params=pltpu.CompilerParams(
            dimension_semantics=("parallel",)),
    )(x_flat, w1m, b1m, w2m, b2m)
    return out.reshape(N, Cout, H, W)


def _reference(x, params, eps=1e-5):
    """Pure-JAX (XLA conv) reference: conv -> eval-mode BN -> ReLU, twice."""
    def conv_bn_relu(h, w, b, gamma, beta, mean, var):
        y = lax.conv_general_dilated(
            h, w, window_strides=(1, 1), padding=((1, 1), (1, 1)),
            dimension_numbers=("NCHW", "OIHW", "NCHW"),
            precision=lax.Precision.HIGHEST)
        y = y + b[None, :, None, None]
        y = (y - mean[None, :, None, None]) * (
            gamma[None, :, None, None]
            / jnp.sqrt(var[None, :, None, None] + eps)) + beta[None, :, None, None]
        return jnp.maximum(y, 0.0)

    h = conv_bn_relu(x, params["conv1_w"], params["conv1_b"], params["bn1_g"],
                     params["bn1_b"], params["bn1_m"], params["bn1_v"])
    return conv_bn_relu(h, params["conv2_w"], params["conv2_b"], params["bn2_g"],
                        params["bn2_b"], params["bn2_m"], params["bn2_v"])


def _init_params(key, cin, cout):
    """PyTorch-style conv init; non-trivial BN stats so folding is exercised."""
    k = jax.random.split(key, 12)
    bound1 = (cin * 9) ** -0.5
    bound2 = (cout * 9) ** -0.5
    return {
        "conv1_w": jax.random.uniform(k[0], (cout, cin, 3, 3), jnp.float32,
                                      -bound1, bound1),
        "conv1_b": jax.random.uniform(k[1], (cout,), jnp.float32, -bound1, bound1),
        "bn1_g": jax.random.uniform(k[2], (cout,), jnp.float32, 0.5, 1.5),
        "bn1_b": 0.1 * jax.random.normal(k[3], (cout,), jnp.float32),
        "bn1_m": 0.1 * jax.random.normal(k[4], (cout,), jnp.float32),
        "bn1_v": jax.random.uniform(k[5], (cout,), jnp.float32, 0.5, 1.5),
        "conv2_w": jax.random.uniform(k[6], (cout, cout, 3, 3), jnp.float32,
                                      -bound2, bound2),
        "conv2_b": jax.random.uniform(k[7], (cout,), jnp.float32, -bound2, bound2),
        "bn2_g": jax.random.uniform(k[8], (cout,), jnp.float32, 0.5, 1.5),
        "bn2_b": 0.1 * jax.random.normal(k[9], (cout,), jnp.float32),
        "bn2_m": 0.1 * jax.random.normal(k[10], (cout,), jnp.float32),
        "bn2_v": jax.random.uniform(k[11], (cout,), jnp.float32, 0.5, 1.5),
    }


if __name__ == "__main__":
    key = jax.random.PRNGKey(0)
    kx, kp = jax.random.split(key)

    # N=4 exercises both the batched grid step (B=2 images/step) and grid=(2,).
    N, Cin, Cout, H, W = 4, 4, 8, 16, 16
    x = jax.random.normal(kx, (N, Cin, H, W), jnp.float32)
    params = _init_params(kp, Cin, Cout)

    out = jax.jit(convblock_forward)(x, params)
    out = jax.block_until_ready(out)

    ref = _reference(x, params)
    assert out.shape == (N, Cout, H, W)
    assert jnp.allclose(out, ref, rtol=1e-4, atol=1e-4), "mismatch vs XLA reference"
    print("KERNEL_OK")
</pallas_src>

<mosaic_0001>
module attributes {stable_mosaic.version = 11 : i64} {
  func.func @_convblock_kernel(%arg0: i32, %arg1: memref<2x8x256xf32, #tpu.memory_space<vmem>>, %arg2: memref<8x72xf32, #tpu.memory_space<vmem>>, %arg3: memref<8x1xf32, #tpu.memory_space<vmem>>, %arg4: memref<8x72xf32, #tpu.memory_space<vmem>>, %arg5: memref<8x1xf32, #tpu.memory_space<vmem>>, %arg6: memref<2x8x256xf32, #tpu.memory_space<vmem>>, %arg7: memref<8x1024xf32, #tpu.memory_space<vmem>>) attributes {dimension_semantics = [#tpu.dimension_semantics<parallel>], iteration_bounds = array<i64: 2>, scalar_prefetch = 0 : i64, scratch_operands = 1 : i64, tpu.core_type = #tpu.core_type<tc>, window_params = [{transform_indices = @transform_0, window_bounds = array<i64: 2, 8, 256>}, {pipeline_mode = #tpu.pipeline_mode<synchronous>, transform_indices = @transform_1, window_bounds = array<i64: 8, 72>}, {pipeline_mode = #tpu.pipeline_mode<synchronous>, transform_indices = @transform_2, window_bounds = array<i64: 8, 1>}, {pipeline_mode = #tpu.pipeline_mode<synchronous>, transform_indices = @transform_3, window_bounds = array<i64: 8, 72>}, {pipeline_mode = #tpu.pipeline_mode<synchronous>, transform_indices = @transform_4, window_bounds = array<i64: 8, 1>}, {transform_indices = @transform_5, window_bounds = array<i64: 2, 8, 256>}]} {
    %cst = arith.constant 0.000000e+00 : f32
    %0 = vector.broadcast %cst : f32 to vector<8x128xf32>
    %c0 = arith.constant 0 : index
    %c0_0 = arith.constant 0 : index
    %1 = vector.load %arg7[%c0, %c0_0] : memref<8x1024xf32, #tpu.memory_space<vmem>>, vector<8x128xf32>
    tpu.vector_store %arg7[%c0, %c0_0], %0 {strides = array<i32>} : memref<8x1024xf32, #tpu.memory_space<vmem>>, vector<8x128xf32>,
    %cst_1 = arith.constant 0.000000e+00 : f32
    %2 = vector.broadcast %cst_1 : f32 to vector<8x128xf32>
    %c0_2 = arith.constant 0 : index
    %c384 = arith.constant 384 : index
    %3 = vector.load %arg7[%c0_2, %c384] : memref<8x1024xf32, #tpu.memory_space<vmem>>, vector<8x128xf32>
    tpu.vector_store %arg7[%c0_2, %c384], %2 {strides = array<i32>} : memref<8x1024xf32, #tpu.memory_space<vmem>>, vector<8x128xf32>,
    %cst_3 = arith.constant 0.000000e+00 : f32
    %4 = vector.broadcast %cst_3 : f32 to vector<8x128xf32>
    %c0_4 = arith.constant 0 : index
    %c512 = arith.constant 512 : index
    %5 = vector.load %arg7[%c0_4, %c512] : memref<8x1024xf32, #tpu.memory_space<vmem>>, vector<8x128xf32>
    tpu.vector_store %arg7[%c0_4, %c512], %4 {strides = array<i32>} : memref<8x1024xf32, #tpu.memory_space<vmem>>, vector<8x128xf32>,
    %cst_5 = arith.constant 0.000000e+00 : f32
    %6 = vector.broadcast %cst_5 : f32 to vector<8x128xf32>
    %c0_6 = arith.constant 0 : index
    %c896 = arith.constant 896 : index
    %7 = vector.load %arg7[%c0_6, %c896] : memref<8x1024xf32, #tpu.memory_space<vmem>>, vector<8x128xf32>
    tpu.vector_store %arg7[%c0_6, %c896], %6 {strides = array<i32>} : memref<8x1024xf32, #tpu.memory_space<vmem>>, vector<8x128xf32>,
    %8 = tpu.iota {dimensions = array<i32: 1>} : vector<8x256xi32>
    %c16_i32 = arith.constant 16 : i32
    %c0_i32 = arith.constant 0 : i32
    %9 = arith.cmpi eq, %c16_i32, %c0_i32 : i32
    %c1_i32 = arith.constant 1 : i32
    %10 = arith.select %9, %c1_i32, %c16_i32 : i32
    %11 = vector.broadcast %10 : i32 to vector<8x256xi32>
    %12 = arith.remsi %8, %11 : vector<8x256xi32>
    %c0_i32_7 = arith.constant 0 : i32
    %13 = vector.broadcast %c0_i32_7 : i32 to vector<8x256xi32>
    %14 = arith.cmpi ne, %12, %13 : vector<8x256xi32>
    %c0_i32_8 = arith.constant 0 : i32
    %15 = vector.broadcast %c0_i32_8 : i32 to vector<8x256xi32>
    %16 = arith.cmpi slt, %12, %15 : vector<8x256xi32>
    %c0_i32_9 = arith.constant 0 : i32
    %17 = arith.cmpi slt, %10, %c0_i32_9 : i32
    %18 = vector.broadcast %17 : i1 to vector<8x256xi1>
    %19 = vector.broadcast %18 : vector<8x256xi1> to vector<8x256xi1>
    %20 = arith.xori %16, %19 : vector<8x256xi1>
    %21 = arith.andi %20, %14 : vector<8x256xi1>
    %22 = vector.broadcast %10 : i32 to vector<8x256xi32>
    %23 = arith.addi %12, %22 : vector<8x256xi32>
    %24 = arith.select %21, %23, %12 : vector<8x256xi1>, vector<8x256xi32>
    %c0_i32_10 = arith.constant 0 : i32
    %25 = vector.broadcast %c0_i32_10 : i32 to vector<8x256xi32>
    %26 = arith.cmpi sgt, %24, %25 : vector<8x256xi32>
    %c15_i32 = arith.constant 15 : i32
    %27 = vector.broadcast %c15_i32 : i32 to vector<8x256xi32>
    %28 = arith.cmpi slt, %24, %27 : vector<8x256xi32>
    %c0_11 = arith.constant 0 : index
    %c0_12 = arith.constant 0 : index
    %c0_13 = arith.constant 0 : index
    %29 = vector.load %arg1[%c0_11, %c0_12, %c0_13] : memref<2x8x256xf32, #tpu.memory_space<vmem>>, vector<1x8x256xf32>
    %30 = vector.shape_cast %29 : vector<1x8x256xf32> to vector<8x256xf32>
    %c0_14 = arith.constant 0 : index
    %c128 = arith.constant 128 : index
    %31 = vector.load %arg7[%c0_14, %c128] : memref<8x1024xf32, #tpu.memory_space<vmem>>, vector<8x256xf32>
    tpu.vector_store %arg7[%c0_14, %c128], %30 {strides = array<i32>} : memref<8x1024xf32, #tpu.memory_space<vmem>>, vector<8x256xf32>,
    %c1 = arith.constant 1 : index
    %c0_15 = arith.constant 0 : index
    %c0_16 = arith.constant 0 : index
    %32 = vector.load %arg1[%c1, %c0_15, %c0_16] : memref<2x8x256xf32, #tpu.memory_space<vmem>>, vector<1x8x256xf32>
    %33 = vector.shape_cast %32 : vector<1x8x256xf32> to vector<8x256xf32>
    %c0_17 = arith.constant 0 : index
    %c640 = arith.constant 640 : index
    %34 = vector.load %arg7[%c0_17, %c640] : memref<8x1024xf32, #tpu.memory_space<vmem>>, vector<8x256xf32>
    tpu.vector_store %arg7[%c0_17, %c640], %33 {strides = array<i32>} : memref<8x1024xf32, #tpu.memory_space<vmem>>, vector<8x256xf32>,
    %c0_18 = arith.constant 0 : index
    %c111 = arith.constant 111 : index
    %35 = vector.load %arg7[%c0_18, %c111] : memref<8x1024xf32, #tpu.memory_space<vmem>>, vector<8x256xf32>
    %cst_19 = arith.constant 0.000000e+00 : f32
    %36 = vector.broadcast %cst_19 : f32 to vector<8x256xf32>
    %37 = arith.select %26, %35, %36 : vector<8x256xi1>, vector<8x256xf32>
    %c0_20 = arith.constant 0 : index
    %c112 = arith.constant 112 : index
    %38 = vector.load %arg7[%c0_20, %c112] : memref<8x1024xf32, #tpu.memory_space<vmem>>, vector<8x256xf32>
    %c0_21 = arith.constant 0 : index
    %c113 = arith.constant 113 : index
    %39 = vector.load %arg7[%c0_21, %c113] : memref<8x1024xf32, #tpu.memory_space<vmem>>, vector<8x256xf32>
    %cst_22 = arith.constant 0.000000e+00 : f32
    %40 = vector.broadcast %cst_22 : f32 to vector<8x256xf32>
    %41 = arith.select %28, %39, %40 : vector<8x256xi1>, vector<8x256xf32>
    %c0_23 = arith.constant 0 : index
    %c127 = arith.constant 127 : index
    %42 = vector.load %arg7[%c0_23, %c127] : memref<8x1024xf32, #tpu.memory_space<vmem>>, vector<8x256xf32>
    %cst_24 = arith.constant 0.000000e+00 : f32
    %43 = vector.broadcast %cst_24 : f32 to vector<8x256xf32>
    %44 = arith.select %26, %42, %43 : vector<8x256xi1>, vector<8x256xf32>
    %c0_25 = arith.constant 0 : index
    %c128_26 = arith.constant 128 : index
    %45 = vector.load %arg7[%c0_25, %c128_26] : memref<8x1024xf32, #tpu.memory_space<vmem>>, vector<8x256xf32>
    %c0_27 = arith.constant 0 : index
    %c129 = arith.constant 129 : index
    %46 = vector.load %arg7[%c0_27, %c129] : memref<8x1024xf32, #tpu.memory_space<vmem>>, vector<8x256xf32>
    %cst_28 = arith.constant 0.000000e+00 : f32
    %47 = vector.broadcast %cst_28 : f32 to vector<8x256xf32>
    %48 = arith.select %28, %46, %47 : vector<8x256xi1>, vector<8x256xf32>
    %c0_29 = arith.constant 0 : index
    %c143 = arith.constant 143 : index
    %49 = vector.load %arg7[%c0_29, %c143] : memref<8x1024xf32, #tpu.memory_space<vmem>>, vector<8x256xf32>
    %cst_30 = arith.constant 0.000000e+00 : f32
    %50 = vector.broadcast %cst_30 : f32 to vector<8x256xf32>
    %51 = arith.select %26, %49, %50 : vector<8x256xi1>, vector<8x256xf32>
    %c0_31 = arith.constant 0 : index
    %c144 = arith.constant 144 : index
    %52 = vector.load %arg7[%c0_31, %c144] : memref<8x1024xf32, #tpu.memory_space<vmem>>, vector<8x256xf32>
    %c0_32 = arith.constant 0 : index
    %c145 = arith.constant 145 : index
    %53 = vector.load %arg7[%c0_32, %c145] : memref<8x1024xf32, #tpu.memory_space<vmem>>, vector<8x256xf32>
    %cst_33 = arith.constant 0.000000e+00 : f32
    %54 = vector.broadcast %cst_33 : f32 to vector<8x256xf32>
    %55 = arith.select %28, %53, %54 : vector<8x256xi1>, vector<8x256xf32>
    %56 = tpu.concatenate %37, %38, %41, %44, %45, %48, %51, %52, %55 in 0 : vector<8x256xf32>, vector<8x256xf32>, vector<8x256xf32>, vector<8x256xf32>, vector<8x256xf32>, vector<8x256xf32>, vector<8x256xf32>, vector<8x256xf32>, vector<8x256xf32> -> vector<72x256xf32>
    %c0_34 = arith.constant 0 : index
    %c623 = arith.constant 623 : index
    %57 = vector.load %arg7[%c0_34, %c623] : memref<8x1024xf32, #tpu.memory_space<vmem>>, vector<8x256xf32>
    %cst_35 = arith.constant 0.000000e+00 : f32
    %58 = vector.broadcast %cst_35 : f32 to vector<8x256xf32>
    %59 = arith.select %26, %57, %58 : vector<8x256xi1>, vector<8x256xf32>
    %c0_36 = arith.constant 0 : index
    %c624 = arith.constant 624 : index
    %60 = vector.load %arg7[%c0_36, %c624] : memref<8x1024xf32, #tpu.memory_space<vmem>>, vector<8x256xf32>
    %c0_37 = arith.constant 0 : index
    %c625 = arith.constant 625 : index
    %61 = vector.load %arg7[%c0_37, %c625] : memref<8x1024xf32, #tpu.memory_space<vmem>>, vector<8x256xf32>
    %cst_38 = arith.constant 0.000000e+00 : f32
    %62 = vector.broadcast %cst_38 : f32 to vector<8x256xf32>
    %63 = arith.select %28, %61, %62 : vector<8x256xi1>, vector<8x256xf32>
    %c0_39 = arith.constant 0 : index
    %c639 = arith.constant 639 : index
    %64 = vector.load %arg7[%c0_39, %c639] : memref<8x1024xf32, #tpu.memory_space<vmem>>, vector<8x256xf32>
    %cst_40 = arith.constant 0.000000e+00 : f32
    %65 = vector.broadcast %cst_40 : f32 to vector<8x256xf32>
    %66 = arith.select %26, %64, %65 : vector<8x256xi1>, vector<8x256xf32>
    %c0_41 = arith.constant 0 : index
    %c640_42 = arith.constant 640 : index
    %67 = vector.load %arg7[%c0_41, %c640_42] : memref<8x1024xf32, #tpu.memory_space<vmem>>, vector<8x256xf32>
    %c0_43 = arith.constant 0 : index
    %c641 = arith.constant 641 : index
    %68 = vector.load %arg7[%c0_43, %c641] : memref<8x1024xf32, #tpu.memory_space<vmem>>, vector<8x256xf32>
    %cst_44 = arith.constant 0.000000e+00 : f32
    %69 = vector.broadcast %cst_44 : f32 to vector<8x256xf32>
    %70 = arith.select %28, %68, %69 : vector<8x256xi1>, vector<8x256xf32>
    %c0_45 = arith.constant 0 : index
    %c655 = arith.constant 655 : index
    %71 = vector.load %arg7[%c0_45, %c655] : memref<8x1024xf32, #tpu.memory_space<vmem>>, vector<8x256xf32>
    %cst_46 = arith.constant 0.000000e+00 : f32
    %72 = vector.broadcast %cst_46 : f32 to vector<8x256xf32>
    %73 = arith.select %26, %71, %72 : vector<8x256xi1>, vector<8x256xf32>
    %c0_47 = arith.constant 0 : index
    %c656 = arith.constant 656 : index
    %74 = vector.load %arg7[%c0_47, %c656] : memref<8x1024xf32, #tpu.memory_space<vmem>>, vector<8x256xf32>
    %c0_48 = arith.constant 0 : index
    %c657 = arith.constant 657 : index
    %75 = vector.load %arg7[%c0_48, %c657] : memref<8x1024xf32, #tpu.memory_space<vmem>>, vector<8x256xf32>
    %cst_49 = arith.constant 0.000000e+00 : f32
    %76 = vector.broadcast %cst_49 : f32 to vector<8x256xf32>
    %77 = arith.select %28, %75, %76 : vector<8x256xi1>, vector<8x256xf32>
    %78 = tpu.concatenate %59, %60, %63, %66, %67, %70, %73, %74, %77 in 0 : vector<8x256xf32>, vector<8x256xf32>, vector<8x256xf32>, vector<8x256xf32>, vector<8x256xf32>, vector<8x256xf32>, vector<8x256xf32>, vector<8x256xf32>, vector<8x256xf32> -> vector<72x256xf32>
    %79 = tpu.concatenate %56, %78 in 1 : vector<72x256xf32>, vector<72x256xf32> -> vector<72x512xf32>
    %c0_50 = arith.constant 0 : index
    %c0_51 = arith.constant 0 : index
    %80 = vector.load %arg2[%c0_50, %c0_51] : memref<8x72xf32, #tpu.memory_space<vmem>>, vector<8x72xf32>
    %cst_52 = arith.constant dense<0.000000e+00> : vector<8x512xf32>
    %81 = tpu.matmul %80, %79, %cst_52 {dimension_numbers = #tpu.dot_dimension_numbers<[1], [0], [0], [1], [0, 0, 1, 1], [], []>} : vector<8x72xf32>, vector<72x512xf32>, vector<8x512xf32> -> vector<8x512xf32>
    %c0_53 = arith.constant 0 : index
    %c0_54 = arith.constant 0 : index
    %82 = vector.load %arg3[%c0_53, %c0_54] : memref<8x1xf32, #tpu.memory_space<vmem>>, vector<8x1xf32>
    %83 = vector.broadcast %82 : vector<8x1xf32> to vector<8x512xf32>
    %84 = arith.addf %81, %83 : vector<8x512xf32>
    %cst_55 = arith.constant 0.000000e+00 : f32
    %85 = vector.broadcast %cst_55 : f32 to vector<8x512xf32>
    %86 = arith.maximumf %84, %85 : vector<8x512xf32>
    %87 = vector.extract_strided_slice %86 {offsets = [0, 0], sizes = [8, 256], strides = [1, 1]} : vector<8x512xf32> to vector<8x256xf32>
    %c0_56 = arith.constant 0 : index
    %c128_57 = arith.constant 128 : index
    %88 = vector.load %arg7[%c0_56, %c128_57] : memref<8x1024xf32, #tpu.memory_space<vmem>>, vector<8x256xf32>
    tpu.vector_store %arg7[%c0_56, %c128_57], %87 {strides = array<i32>} : memref<8x1024xf32, #tpu.memory_space<vmem>>, vector<8x256xf32>,
    %89 = vector.extract_strided_slice %86 {offsets = [0, 256], sizes = [8, 256], strides = [1, 1]} : vector<8x512xf32> to vector<8x256xf32>
    %c0_58 = arith.constant 0 : index
    %c640_59 = arith.constant 640 : index
    %90 = vector.load %arg7[%c0_58, %c640_59] : memref<8x1024xf32, #tpu.memory_space<vmem>>, vector<8x256xf32>
    tpu.vector_store %arg7[%c0_58, %c640_59], %89 {strides = array<i32>} : memref<8x1024xf32, #tpu.memory_space<vmem>>, vector<8x256xf32>,
    %c0_60 = arith.constant 0 : index
    %c111_61 = arith.constant 111 : index
    %91 = vector.load %arg7[%c0_60, %c111_61] : memref<8x1024xf32, #tpu.memory_space<vmem>>, vector<8x256xf32>
    %cst_62 = arith.constant 0.000000e+00 : f32
    %92 = vector.broadcast %cst_62 : f32 to vector<8x256xf32>
    %93 = arith.select %26, %91, %92 : vector<8x256xi1>, vector<8x256xf32>
    %c0_63 = arith.constant 0 : index
    %c112_64 = arith.constant 112 : index
    %94 = vector.load %arg7[%c0_63, %c112_64] : memref<8x1024xf32, #tpu.memory_space<vmem>>, vector<8x256xf32>
    %c0_65 = arith.constant 0 : index
    %c113_66 = arith.constant 113 : index
    %95 = vector.load %arg7[%c0_65, %c113_66] : memref<8x1024xf32, #tpu.memory_space<vmem>>, vector<8x256xf32>
    %cst_67 = arith.constant 0.000000e+00 : f32
    %96 = vector.broadcast %cst_67 : f32 to vector<8x256xf32>
    %97 = arith.select %28, %95, %96 : vector<8x256xi1>, vector<8x256xf32>
    %c0_68 = arith.constant 0 : index
    %c127_69 = arith.constant 127 : index
    %98 = vector.load %arg7[%c0_68, %c127_69] : memref<8x1024xf32, #tpu.memory_space<vmem>>, vector<8x256xf32>
    %cst_70 = arith.constant 0.000000e+00 : f32
    %99 = vector.broadcast %cst_70 : f32 to vector<8x256xf32>
    %100 = arith.select %26, %98, %99 : vector<8x256xi1>, vector<8x256xf32>
    %c0_71 = arith.constant 0 : index
    %c128_72 = arith.constant 128 : index
    %101 = vector.load %arg7[%c0_71, %c128_72] : memref<8x1024xf32, #tpu.memory_space<vmem>>, vector<8x256xf32>
    %c0_73 = arith.constant 0 : index
    %c129_74 = arith.constant 129 : index
    %102 = vector.load %arg7[%c0_73, %c129_74] : memref<8x1024xf32, #tpu.memory_space<vmem>>, vector<8x256xf32>
    %cst_75 = arith.constant 0.000000e+00 : f32
    %103 = vector.broadcast %cst_75 : f32 to vector<8x256xf32>
    %104 = arith.select %28, %102, %103 : vector<8x256xi1>, vector<8x256xf32>
    %c0_76 = arith.constant 0 : index
    %c143_77 = arith.constant 143 : index
    %105 = vector.load %arg7[%c0_76, %c143_77] : memref<8x1024xf32, #tpu.memory_space<vmem>>, vector<8x256xf32>
    %cst_78 = arith.constant 0.000000e+00 : f32
    %106 = vector.broadcast %cst_78 : f32 to vector<8x256xf32>
    %107 = arith.select %26, %105, %106 : vector<8x256xi1>, vector<8x256xf32>
    %c0_79 = arith.constant 0 : index
    %c144_80 = arith.constant 144 : index
    %108 = vector.load %arg7[%c0_79, %c144_80] : memref<8x1024xf32, #tpu.memory_space<vmem>>, vector<8x256xf32>
    %c0_81 = arith.constant 0 : index
    %c145_82 = arith.constant 145 : index
    %109 = vector.load %arg7[%c0_81, %c145_82] : memref<8x1024xf32, #tpu.memory_space<vmem>>, vector<8x256xf32>
    %cst_83 = arith.constant 0.000000e+00 : f32
    %110 = vector.broadcast %cst_83 : f32 to vector<8x256xf32>
    %111 = arith.select %28, %109, %110 : vector<8x256xi1>, vector<8x256xf32>
    %112 = tpu.concatenate %93, %94, %97, %100, %101, %104, %107, %108, %111 in 0 : vector<8x256xf32>, vector<8x256xf32>, vector<8x256xf32>, vector<8x256xf32>, vector<8x256xf32>, vector<8x256xf32>, vector<8x256xf32>, vector<8x256xf32>, vector<8x256xf32> -> vector<72x256xf32>
    %c0_84 = arith.constant 0 : index
    %c623_85 = arith.constant 623 : index
    %113 = vector.load %arg7[%c0_84, %c623_85] : memref<8x1024xf32, #tpu.memory_space<vmem>>, vector<8x256xf32>
    %cst_86 = arith.constant 0.000000e+00 : f32
    %114 = vector.broadcast %cst_86 : f32 to vector<8x256xf32>
    %115 = arith.select %26, %113, %114 : vector<8x256xi1>, vector<8x256xf32>
    %c0_87 = arith.constant 0 : index
    %c624_88 = arith.constant 624 : index
    %116 = vector.load %arg7[%c0_87, %c624_88] : memref<8x1024xf32, #tpu.memory_space<vmem>>, vector<8x256xf32>
    %c0_89 = arith.constant 0 : index
    %c625_90 = arith.constant 625 : index
    %117 = vector.load %arg7[%c0_89, %c625_90] : memref<8x1024xf32, #tpu.memory_space<vmem>>, vector<8x256xf32>
    %cst_91 = arith.constant 0.000000e+00 : f32
    %118 = vector.broadcast %cst_91 : f32 to vector<8x256xf32>
    %119 = arith.select %28, %117, %118 : vector<8x256xi1>, vector<8x256xf32>
    %c0_92 = arith.constant 0 : index
    %c639_93 = arith.constant 639 : index
    %120 = vector.load %arg7[%c0_92, %c639_93] : memref<8x1024xf32, #tpu.memory_space<vmem>>, vector<8x256xf32>
    %cst_94 = arith.constant 0.000000e+00 : f32
    %121 = vector.broadcast %cst_94 : f32 to vector<8x256xf32>
    %122 = arith.select %26, %120, %121 : vector<8x256xi1>, vector<8x256xf32>
    %c0_95 = arith.constant 0 : index
    %c640_96 = arith.constant 640 : index
    %123 = vector.load %arg7[%c0_95, %c640_96] : memref<8x1024xf32, #tpu.memory_space<vmem>>, vector<8x256xf32>
    %c0_97 = arith.constant 0 : index
    %c641_98 = arith.constant 641 : index
    %124 = vector.load %arg7[%c0_97, %c641_98] : memref<8x1024xf32, #tpu.memory_space<vmem>>, vector<8x256xf32>
    %cst_99 = arith.constant 0.000000e+00 : f32
    %125 = vector.broadcast %cst_99 : f32 to vector<8x256xf32>
    %126 = arith.select %28, %124, %125 : vector<8x256xi1>, vector<8x256xf32>
    %c0_100 = arith.constant 0 : index
    %c655_101 = arith.constant 655 : index
    %127 = vector.load %arg7[%c0_100, %c655_101] : memref<8x1024xf32, #tpu.memory_space<vmem>>, vector<8x256xf32>
    %cst_102 = arith.constant 0.000000e+00 : f32
    %128 = vector.broadcast %cst_102 : f32 to vector<8x256xf32>
    %129 = arith.select %26, %127, %128 : vector<8x256xi1>, vector<8x256xf32>
    %c0_103 = arith.constant 0 : index
    %c656_104 = arith.constant 656 : index
    %130 = vector.load %arg7[%c0_103, %c656_104] : memref<8x1024xf32, #tpu.memory_space<vmem>>, vector<8x256xf32>
    %c0_105 = arith.constant 0 : index
    %c657_106 = arith.constant 657 : index
    %131 = vector.load %arg7[%c0_105, %c657_106] : memref<8x1024xf32, #tpu.memory_space<vmem>>, vector<8x256xf32>
    %cst_107 = arith.constant 0.000000e+00 : f32
    %132 = vector.broadcast %cst_107 : f32 to vector<8x256xf32>
    %133 = arith.select %28, %131, %132 : vector<8x256xi1>, vector<8x256xf32>
    %134 = tpu.concatenate %115, %116, %119, %122, %123, %126, %129, %130, %133 in 0 : vector<8x256xf32>, vector<8x256xf32>, vector<8x256xf32>, vector<8x256xf32>, vector<8x256xf32>, vector<8x256xf32>, vector<8x256xf32>, vector<8x256xf32>, vector<8x256xf32> -> vector<72x256xf32>
    %135 = tpu.concatenate %112, %134 in 1 : vector<72x256xf32>, vector<72x256xf32> -> vector<72x512xf32>
    %c0_108 = arith.constant 0 : index
    %c0_109 = arith.constant 0 : index
    %136 = vector.load %arg4[%c0_108, %c0_109] : memref<8x72xf32, #tpu.memory_space<vmem>>, vector<8x72xf32>
    %cst_110 = arith.constant dense<0.000000e+00> : vector<8x512xf32>
    %137 = tpu.matmul %136, %135, %cst_110 {dimension_numbers = #tpu.dot_dimension_numbers<[1], [0], [0], [1], [0, 0, 1, 1], [], []>} : vector<8x72xf32>, vector<72x512xf32>, vector<8x512xf32> -> vector<8x512xf32>
    %c0_111 = arith.constant 0 : index
    %c0_112 = arith.constant 0 : index
    %138 = vector.load %arg5[%c0_111, %c0_112] : memref<8x1xf32, #tpu.memory_space<vmem>>, vector<8x1xf32>
    %139 = vector.broadcast %138 : vector<8x1xf32> to vector<8x512xf32>
    %140 = arith.addf %137, %139 : vector<8x512xf32>
    %cst_113 = arith.constant 0.000000e+00 : f32
    %141 = vector.broadcast %cst_113 : f32 to vector<8x512xf32>
    %142 = arith.maximumf %140, %141 : vector<8x512xf32>
    %143 = vector.extract_strided_slice %142 {offsets = [0, 0], sizes = [8, 256], strides = [1, 1]} : vector<8x512xf32> to vector<8x256xf32>
    %c0_114 = arith.constant 0 : index
    %c0_115 = arith.constant 0 : index
    %c0_116 = arith.constant 0 : index
    %144 = vector.load %arg6[%c0_114, %c0_115, %c0_116] : memref<2x8x256xf32, #tpu.memory_space<vmem>>, vector<1x8x256xf32>
    %145 = vector.shape_cast %144 : vector<1x8x256xf32> to vector<8x256xf32>
    %146 = vector.shape_cast %143 : vector<8x256xf32> to vector<1x8x256xf32>
    tpu.vector_store %arg6[%c0_114, %c0_115, %c0_116], %146 {strides = array<i32>} : memref<2x8x256xf32, #tpu.memory_space<vmem>>, vector<1x8x256xf32>,
    %147 = vector.extract_strided_slice %142 {offsets = [0, 256], sizes = [8, 256], strides = [1, 1]} : vector<8x512xf32> to vector<8x256xf32>
    %c1_117 = arith.constant 1 : index
    %c0_118 = arith.constant 0 : index
    %c0_119 = arith.constant 0 : index
    %148 = vector.load %arg6[%c1_117, %c0_118, %c0_119] : memref<2x8x256xf32, #tpu.memory_space<vmem>>, vector<1x8x256xf32>
    %149 = vector.shape_cast %148 : vector<1x8x256xf32> to vector<8x256xf32>
    %150 = vector.shape_cast %147 : vector<8x256xf32> to vector<1x8x256xf32>
    tpu.vector_store %arg6[%c1_117, %c0_118, %c0_119], %150 {strides = array<i32>} : memref<2x8x256xf32, #tpu.memory_space<vmem>>, vector<1x8x256xf32>,
    return
  }
  func.func @transform_0(%arg0: i32) -> (i32, i32, i32) {
    %c0_i32 = arith.constant 0 : i32
    %c0_i32_0 = arith.constant 0 : i32
    %c0_i32_1 = arith.constant 0 : i32
    return %arg0, %c0_i32, %c0_i32_0 : i32, i32, i32
  }
  func.func @transform_1(%arg0: i32) -> (i32, i32) {
    %c0_i32 = arith.constant 0 : i32
    %c0_i32_0 = arith.constant 0 : i32
    %c0_i32_1 = arith.constant 0 : i32
    return %c0_i32, %c0_i32_0 : i32, i32
  }
  func.func @transform_2(%arg0: i32) -> (i32, i32) {
    %c0_i32 = arith.constant 0 : i32
    %c0_i32_0 = arith.constant 0 : i32
    %c0_i32_1 = arith.constant 0 : i32
    return %c0_i32, %c0_i32_0 : i32, i32
  }
  func.func @transform_3(%arg0: i32) -> (i32, i32) {
    %c0_i32 = arith.constant 0 : i32
    %c0_i32_0 = arith.constant 0 : i32
    %c0_i32_1 = arith.constant 0 : i32
    return %c0_i32, %c0_i32_0 : i32, i32
  }
  func.func @transform_4(%arg0: i32) -> (i32, i32) {
    %c0_i32 = arith.constant 0 : i32
    %c0_i32_0 = arith.constant 0 : i32
    %c0_i32_1 = arith.constant 0 : i32
    return %c0_i32, %c0_i32_0 : i32, i32
  }
  func.func @transform_5(%arg0: i32) -> (i32, i32, i32) {
    %c0_i32 = arith.constant 0 : i32
    %c0_i32_0 = arith.constant 0 : i32
    %c0_i32_1 = arith.constant 0 : i32
    return %arg0, %c0_i32, %c0_i32_0 : i32, i32, i32
  }
}

</mosaic_0001>

<bundles_post_ra>
// kernel: convblock_forward.1
= control target key start
LH: loop header
LB: loop body
LE: loop exit
PB: predicated region body
PF: predicated region fallthrough
CT: control target
= control target key end

     0   :  { %s1291_s18 = smov 0   ;;  %s1747_s0 = inlined_call_operand.vmem [shape: f32[4,8,256], index: 0, kind: input, shape index: {}]   ;;  %s1748_s1 = inlined_call_operand.vmem [shape: f32[8,72], index: 1, kind: input, shape index: {}]   ;;  %s1749_s2 = inlined_call_operand.vmem [shape: f32[8,1], index: 2, kind: input, shape index: {}]   ;;  %s1750_s3 = inlined_call_operand.vmem [shape: f32[8,72], index: 3, kind: input, shape index: {}]   ;;  %s1751_s4 = inlined_call_operand.vmem [shape: f32[8,1], index: 4, kind: input, shape index: {}]   ;;  %s1752_s5 = inlined_call_operand.vmem [shape: f32[4,8,256], index: 5, kind: output, shape index: {}]  }
   0x1 LB: > { %s1073_s19 = sadd.s32 4294967295, %s1249_s18   ;;  %p1077_p0 = scmp.ge.s32.totalorder %s1249_s18, 1  ;;  %s1249_s18 = sphi %s1291_s18, %s15_s18  }
   0x2   : > { %p189_p1 = scmp.lt.s32.totalorder %s1249_s18, 3 }
   0x4   : > { %p190_p2 = pnand %p1077_p0, %p189_p1 }
   0x5   : > { %s1078_s20 = sshll.u32 (!%p190_p2), %s1073_s19, 1  ;;  %s1252_s21 = smov (!%p190_p2), 112  }
   0x6   : > { %193 = sbr.rel (%p190_p2) target bundleno = 779 (0x30b), region = 40  ;;  %p220_p3 = scmp.lt.s32.totalorder (!%p190_p2), %s1078_s20, 3 }
   0x7   : > { %s1253_s22 = smov (!%p190_p2), 111   ;;  %s1254_s27 = smov (!%p190_p2), 113  }
   0x8   : > { %s1255_s28 = smov (!%p190_p2), 127   ;;  %s1256_s29 = smov (!%p190_p2), 1  }
   0x9   : > { %s1257_s30 = smov (!%p190_p2), 15   ;;  %s1258_s6 = smov (!%p190_p2), 16  }
   0xa   : > { %s1260_s7 = smov (!%p190_p2), 17  }
   0xb   : > { %v1251_v0 = vmov 0.0   ;;  %s1762_s20 = smov (!%p220_p3, %s1078_s20), 3  ;;  %v1259_v5 = vmov 0   ;;  %v490_v6 = vld [vmem:[%s1749_s2] sm:$0xff]  ;;  %v237_v7 = vlaneseq  ;;  %vm356_vm0 = vcmask 908288  }
   0xc   : > { %564 = vmatprep.mubr.f32.mxu0 %v1251_v0  ;;  %635 = vmatprep.mubr.f32.mxu1 %v1251_v0  ;;  %s1142_s23 = sshll.u32 %s1762_s20, 4  ;;  %vm380_vm3 = vcmask 916480   ;;  %vm343_vm4 = vcmask 924672   ;;  %vm330_vm7 = vcmask 1039360   ;;  %vm315_vm8 = vcmask 7168  }
   0xd   : > { %1168 = vrot.lane.b32.xlu1 %v1251_v0, %s1252_s21  ;;  %1163 = vrot.lane.b32.xlu0 %v1251_v0, %s1253_s22  ;;  %s224_s26 = scalar_lea.vmem %s1747_s0, %s1142_s23  ;;  %v238_v8 = vand.u32 127, %v237_v7  ;;  %vm302_vm9 = vcmask 121856   ;;  %vm369_vm10 = vcmask 130048   ;;  %vm289_vm11 = vcmask 138240   ;;  %s231_s19 = scalar_lea.vmem %s1752_s5, %s1142_s23 }
   0xe   : > { %v1313_v1 = vld [vmem:[%s224_s26 + $0x8] sm:$0xff]  ;;  %v1315_v2 = vld [vmem:[%s224_s26] sm:$0xff]  ;;  %v1321_v3 = vld [vmem:[%s224_s26 + $0x18] sm:$0xff]  ;;  %1202 = vset.pattern.permute.xlu0 %v1259_v5  ;;  %vm496_vm12 = vcmask 588800  }
   0xf   : > { %v1327_v4 = vld [vmem:[%s224_s26 + $0x10] sm:$0xff]  ;;  %v239_v9 = vadd.s32 128, %v238_v8  ;;  %v244_v13 = vand.u32 15, %v238_v8 }
  0x11   : > { %352 = vrot.lane.b32.xlu0 %v1313_v1, %s1253_s22  ;;  %350 = vrot.lane.b32.xlu1 %v1315_v2, %s1253_s22  ;;  %v251_v12 = vand.u32 15, %v239_v9  ;;  %vm1416_vm2 = vcmp.lt.s32.totalorder %v244_v13, 15  ;;  %vm1441_vm6 = vcmp.gt.s32.totalorder %v244_v13, 0 }
  0x13   : > { %vm1412_vm1 = vcmp.lt.s32.totalorder %v251_v12, 15  ;;  %vm1436_vm5 = vcmp.gt.s32.totalorder %v251_v12, 0 }
  0x15   : > { %376 = vrot.lane.b32.xlu0 %v1313_v1, %s1252_s21  ;;  %459 = vrot.lane.b32.xlu1 %v1321_v3, %s1253_s22 }
  0x19   : > { %457 = vrot.lane.b32.xlu0 %v1327_v4, %s1253_s22  ;;  %374 = vrot.lane.b32.xlu1 %v1315_v2, %s1252_s21 }
  0x1d   : > { %481 = vrot.lane.b32.xlu0 %v1321_v3, %s1252_s21  ;;  %339 = vrot.lane.b32.xlu1 %v1313_v1, %s1254_s27 }
  0x21   : > { %1173 = vrot.lane.b32.xlu0 %v1251_v0, %s1254_s27  ;;  %479 = vrot.lane.b32.xlu1 %v1327_v4, %s1252_s21 }
  0x25   : > { %337 = vrot.lane.b32.xlu0 %v1315_v2, %s1254_s27  ;;  %447 = vrot.lane.b32.xlu1 %v1321_v3, %s1254_s27 }
  0x29   : > { %326 = vrot.lane.b32.xlu0 %v1313_v1, %s1255_s28  ;;  %1178 = vrot.lane.b32.xlu1 %v1251_v0, %s1255_s28 }
  0x2d   : > { %445 = vrot.lane.b32.xlu0 %v1327_v4, %s1254_s27  ;;  %324 = vrot.lane.b32.xlu1 %v1315_v2, %s1255_s28 }
  0x31   : > { %435 = vrot.lane.b32.xlu0 %v1321_v3, %s1255_s28  ;;  %433 = vrot.lane.b32.xlu1 %v1327_v4, %s1255_s28 }
  0x35   : > { %311 = vrot.lane.b32.xlu0 %v1315_v2, %s1256_s29  ;;  %313 = vrot.lane.b32.xlu1 %v1313_v1, %s1256_s29 }
  0x39   : > { %1183 = vrot.lane.b32.xlu0 %v1251_v0, %s1256_s29  ;;  %417 = vrot.lane.b32.xlu1 %v1327_v4, %s1256_s29 }
  0x3d   : > { %419 = vrot.lane.b32.xlu0 %v1321_v3, %s1256_s29  ;;  %298 = vrot.lane.b32.xlu1 %v1315_v2, %s1257_s30 }
  0x41   : > { %300 = vrot.lane.b32.xlu0 %v1313_v1, %s1257_s30  ;;  %1188 = vrot.lane.b32.xlu1 %v1251_v0, %s1257_s30 }
  0x45   : > { %405 = vrot.lane.b32.xlu0 %v1327_v4, %s1257_s30  ;;  %407 = vrot.lane.b32.xlu1 %v1321_v3, %s1257_s30 }
  0x49   : > { %365 = vrot.lane.b32.xlu0 %v1315_v2, %s1258_s6  ;;  %367 = vrot.lane.b32.xlu1 %v1313_v1, %s1258_s6 }
  0x4d   : > { %1193 = vrot.lane.b32.xlu0 %v1251_v0, %s1258_s6  ;;  %471 = vrot.lane.b32.xlu1 %v1327_v4, %s1258_s6 }
  0x51   : > { %473 = vrot.lane.b32.xlu0 %v1321_v3, %s1258_s6  ;;  %285 = vrot.lane.b32.xlu1 %v1315_v2, %s1260_s7 }
  0x55   : > { %287 = vrot.lane.b32.xlu0 %v1313_v1, %s1260_s7  ;;  %1198 = vrot.lane.b32.xlu1 %v1251_v0, %s1260_s7 }
  0x59   : > { %393 = vrot.lane.b32.xlu0 %v1327_v4, %s1260_s7  ;;  %395 = vrot.lane.b32.xlu1 %v1321_v3, %s1260_s7 }
  0x5d   : > { %493 = vperm.xlu0 %1202, %v490_v6   ;;  %1204 = vrot.lane.b32.xlu1 %v1251_v0, %s1253_s22 }
  0x61   : > { %1209 = vrot.lane.b32.xlu1 %v1251_v0, %s1252_s21  ;;  %1214 = vrot.lane.b32.xlu0 %v1251_v0, %s1254_s27 }
  0x65   : > { %1219 = vrot.lane.b32.xlu1 %v1251_v0, %s1255_s28  ;;  %1224 = vrot.lane.b32.xlu0 %v1251_v0, %s1256_s29 }
  0x69   : > { %1229 = vrot.lane.b32.xlu1 %v1251_v0, %s1257_s30  ;;  %1234 = vrot.lane.b32.xlu0 %v1251_v0, %s1258_s6 }
  0x6d   : > { %1239 = vrot.lane.b32.xlu1 %v1251_v0, %s1260_s7 }
  0x7f   : > { %v1169_v10 = vpop.permute.xlu1 %1168  ;;  %v1164_v11 = vpop.permute.xlu0 %1163 }
  0x80   : > { %v1165_v14 = vunpack.i.l.bf16 %v1164_v11  ;;  %v1170_v21 = vunpack.i.l.bf16 %v1169_v10  ;;  %v1166_v22 = vunpack.i.h.bf16 %v1164_v11  ;;  %v1171_v31 = vunpack.i.h.bf16 %v1169_v10 }
  0x83   : > { %v353_v16 = vpop.permute.xlu0 %352  ;;  %v351_v17 = vpop.permute.xlu1 %350 }
  0x84   : > { %v358_v19 = vsel %vm356_vm0, %v353_v16, %v1165_v14  ;;  %v357_v20 = vsel %vm356_vm0, %v351_v17, %v353_v16 }
  0x85   : > { %1086 = vmatprep.subr.msk.mxu0 %vm1412_vm1, %v358_v19 }
  0x86   : > { %1087 = vmatpush1.msk.msra.mxu0 %vm1416_vm2, %v357_v20 }
  0x87   : > { %v377_v23 = vpop.permute.xlu0 %376  ;;  %v460_v24 = vpop.permute.xlu1 %459 }
  0x88   : > { %v382_v25 = vsel %vm380_vm3, %v377_v23, %v1170_v21  ;;  %v464_v26 = vsel %vm356_vm0, %v460_v24, %v1166_v22 }
  0x89   : > { %516 = vmatprep.subr.mxu0 %v382_v25  ;;  %1099 = vmatprep.subr.msk.mxu1 %vm1412_vm1, %v464_v26 }
  0x8b   : > { %v458_v27 = vpop.permute.xlu0 %457  ;;  %v375_v28 = vpop.permute.xlu1 %374 }
  0x8c   : > { %v381_v29 = vsel %vm380_vm3, %v375_v28, %v377_v23  ;;  %v463_v30 = vsel %vm356_vm0, %v458_v27, %v460_v24 }
  0x8d   : > { %517 = vmatpush1.msra.mxu0 %v381_v29  ;;  %1100 = vmatpush1.msk.msra.mxu1 %vm1416_vm2, %v463_v30 }
  0x8f   : > { %v482_v32 = vpop.permute.xlu0 %481  ;;  %v340_v33 = vpop.permute.xlu1 %339 }
  0x90   : > { %v486_v34 = vsel %vm380_vm3, %v482_v32, %v1171_v31 }
  0x91   : > { %587 = vmatprep.subr.mxu1 %v486_v34 }
  0x93   : > { %v1174_v35 = vpop.permute.xlu0 %1173  ;;  %v480_v36 = vpop.permute.xlu1 %479 }
  0x94   : > { %v1176_v37 = vunpack.i.h.bf16 %v1174_v35  ;;  %v1175_v38 = vunpack.i.l.bf16 %v1174_v35  ;;  %v485_v39 = vsel %vm380_vm3, %v480_v36, %v482_v32 }
  0x95   : > { %588 = vmatpush1.msra.mxu1 %v485_v39 }
  0x96   : > { %v345_v41 = vsel %vm343_vm4, %v340_v33, %v1175_v38 }
  0x97   : > { %v338_v43 = vpop.permute.xlu0 %337  ;;  %1088 = vmatprep.subr.msk.mxu0 %vm1436_vm5, %v345_v41  ;;  %v448_v44 = vpop.permute.xlu1 %447 }
  0x98   : > { %v344_v45 = vsel %vm343_vm4, %v338_v43, %v340_v33  ;;  %v452_v46 = vsel %vm343_vm4, %v448_v44, %v1176_v37  ;;  %v489_v37 = vld [vmem:[%s1748_s1] sm:$0xff] }
  0x99   : > { %1089 = vmatpush1.msk.msra.mxu0 %vm1441_vm6, %v344_v45  ;;  %1101 = vmatprep.subr.msk.mxu1 %vm1436_vm5, %v452_v46 }
  0x9b   : > { %v327_v47 = vpop.permute.xlu0 %326  ;;  %v1179_v48 = vpop.permute.xlu1 %1178 }
  0x9c   : > { %v1180_v49 = vunpack.i.l.bf16 %v1179_v48  ;;  %v1181_v55 = vunpack.i.h.bf16 %v1179_v48 }
  0x9e   : > { %v332_v50 = vsel %vm330_vm7, %v327_v47, %v1180_v49 }
  0x9f   : > { %v446_v51 = vpop.permute.xlu0 %445  ;;  %v325_v52 = vpop.permute.xlu1 %324  ;;  %1090 = vmatprep.subr.msk.mxu0 %vm1412_vm1, %v332_v50 }
  0xa0   : > { %v451_v53 = vsel %vm343_vm4, %v446_v51, %v448_v44  ;;  %v331_v54 = vsel %vm330_vm7, %v325_v52, %v327_v47 }
  0xa1   : > { %1091 = vmatpush1.msk.msra.mxu0 %vm1416_vm2, %v331_v54  ;;  %1102 = vmatpush1.msk.msra.mxu1 %vm1441_vm6, %v451_v53 }
  0xa2   : > { %522 = vmatprep.subr.mxu0 %v1313_v1 }
  0xa3   : > { %v436_v56 = vpop.permute.xlu0 %435  ;;  %v434_v57 = vpop.permute.xlu1 %433  ;;  %523 = vmatpush1.msra.mxu0 %v1315_v2 }
  0xa4   : > { %v440_v58 = vsel %vm330_vm7, %v436_v56, %v1181_v55  ;;  %v439_v59 = vsel %vm330_vm7, %v434_v57, %v436_v56 }
  0xa5   : > { %1103 = vmatprep.subr.msk.mxu1 %vm1412_vm1, %v440_v58  ;;  %v855_v58 = vld [vmem:[%s1751_s4] sm:$0xff] }
  0xa6   : > { %1104 = vmatpush1.msk.msra.mxu1 %vm1416_vm2, %v439_v59 }
  0xa7   : > { %v312_v60 = vpop.permute.xlu0 %311  ;;  %v314_v61 = vpop.permute.xlu1 %313  ;;  %593 = vmatprep.subr.mxu1 %v1321_v3 }
  0xa8   : > { %v317_v62 = vsel %vm315_vm8, %v312_v60, %v314_v61  ;;  %594 = vmatpush1.msra.mxu1 %v1327_v4 }
  0xa9   : > { %1092 = vmatprep.subr.msk.mxu0 %vm1436_vm5, %v317_v62 }
  0xab   : > { %v1184_v63 = vpop.permute.xlu0 %1183  ;;  %v418_v1 = vpop.permute.xlu1 %417 }
  0xac   : > { %v1185_v2 = vunpack.i.l.bf16 %v1184_v63  ;;  %v1186_v5 = vunpack.i.h.bf16 %v1184_v63 }
  0xae   : > { %v316_v6 = vsel %vm315_vm8, %v1185_v2, %v312_v60  ;;  %v421_v9 = vsel %vm315_vm8, %v1186_v5, %v418_v1 }
  0xaf   : > { %v420_v7 = vpop.permute.xlu0 %419  ;;  %v299_v8 = vpop.permute.xlu1 %298  ;;  %1093 = vmatpush1.msk.msra.mxu0 %vm1441_vm6, %v316_v6 }
  0xb0   : > { %v422_v3 = vsel %vm315_vm8, %v418_v1, %v420_v7 }
  0xb1   : > { %1105 = vmatprep.subr.msk.mxu1 %vm1436_vm5, %v422_v3 }
  0xb2   : > { %1106 = vmatpush1.msk.msra.mxu1 %vm1441_vm6, %v421_v9 }
  0xb3   : > { %v301_v4 = vpop.permute.xlu0 %300  ;;  %v1189_v10 = vpop.permute.xlu1 %1188 }
  0xb4   : > { %v304_v11 = vsel %vm302_vm9, %v299_v8, %v301_v4  ;;  %v1190_v12 = vunpack.i.l.bf16 %v1189_v10  ;;  %v1191_v13 = vunpack.i.h.bf16 %v1189_v10 }
  0xb5   : > { %1094 = vmatprep.subr.msk.mxu0 %vm1412_vm1, %v304_v11 }
  0xb6   : > { %v303_v14 = vsel %vm302_vm9, %v1190_v12, %v299_v8 }
  0xb7   : > { %v406_v16 = vpop.permute.xlu0 %405  ;;  %v408_v17 = vpop.permute.xlu1 %407  ;;  %1095 = vmatpush1.msk.msra.mxu0 %vm1416_vm2, %v303_v14 }
  0xb8   : > { %v409_v19 = vsel %vm302_vm9, %v1191_v13, %v406_v16  ;;  %v410_v20 = vsel %vm302_vm9, %v406_v16, %v408_v17 }
  0xb9   : > { %1107 = vmatprep.subr.msk.mxu1 %vm1412_vm1, %v410_v20 }
  0xba   : > { %1108 = vmatpush1.msk.msra.mxu1 %vm1416_vm2, %v409_v19 }
  0xbb   : > { %v366_v21 = vpop.permute.xlu0 %365  ;;  %v368_v22 = vpop.permute.xlu1 %367 }
  0xbc   : > { %v371_v23 = vsel %vm369_vm10, %v366_v21, %v368_v22 }
  0xbd   : > { %528 = vmatprep.subr.mxu0 %v371_v23 }
  0xbf   : > { %v1194_v24 = vpop.permute.xlu0 %1193  ;;  %v472_v25 = vpop.permute.xlu1 %471 }
  0xc0   : > { %v1195_v26 = vunpack.i.l.bf16 %v1194_v24  ;;  %v1196_v27 = vunpack.i.h.bf16 %v1194_v24 }
  0xc2   : > { %v370_v28 = vsel %vm369_vm10, %v1195_v26, %v366_v21  ;;  %v475_v32 = vsel %vm369_vm10, %v1196_v27, %v472_v25 }
  0xc3   : > { %v474_v29 = vpop.permute.xlu0 %473  ;;  %v286_v30 = vpop.permute.xlu1 %285  ;;  %529 = vmatpush1.msra.mxu0 %v370_v28 }
  0xc4   : > { %v476_v31 = vsel %vm369_vm10, %v472_v25, %v474_v29 }
  0xc5   : > { %599 = vmatprep.subr.mxu1 %v476_v31 }
  0xc6   : > { %600 = vmatpush1.msra.mxu1 %v475_v32 }
  0xc7   : > { %v288_v33 = vpop.permute.xlu0 %287  ;;  %v1199_v34 = vpop.permute.xlu1 %1198 }
  0xc8   : > { %v291_v35 = vsel %vm289_vm11, %v286_v30, %v288_v33  ;;  %v1200_v36 = vunpack.i.l.bf16 %v1199_v34  ;;  %v1201_v38 = vunpack.i.h.bf16 %v1199_v34 }
  0xc9   : > { %1096 = vmatprep.subr.msk.mxu0 %vm1436_vm5, %v291_v35 }
  0xca   : > { %v290_v39 = vsel %vm289_vm11, %v1200_v36, %v286_v30 }
  0xcb   : > { %v394_v41 = vpop.permute.xlu0 %393  ;;  %v396_v43 = vpop.permute.xlu1 %395  ;;  %1097 = vmatpush1.msk.msra.mxu0 %vm1441_vm6, %v290_v39 }
  0xcc   : > { %v397_v44 = vsel %vm289_vm11, %v1201_v38, %v394_v41  ;;  %v398_v45 = vsel %vm289_vm11, %v394_v41, %v396_v43  ;;  %1098 = vmatmul.mubr.msk.f32.vlgmr.msra.gmra.mxu0 %vm496_vm12, %v489_v37 }
  0xcd   : > { %1109 = vmatprep.subr.msk.mxu1 %vm1436_vm5, %v398_v45  ;;  %928 = vmatprep.mubr.f32.mxu0 %v1251_v0 }
  0xce   : > { %1110 = vmatpush1.msk.msra.mxu1 %vm1441_vm6, %v397_v44 }
  0xcf   : > { %1111 = vmatmul.mubr.msk.f32.vlgmr.msra.gmra.mxu1 %vm496_vm12, %v489_v37  ;;  %v1205_v59 = vpop.permute.xlu1 %1204 }
  0xd0   : > { %999 = vmatprep.mubr.f32.mxu1 %v1251_v0  ;;  %v1206_v22 = vunpack.i.l.bf16 %v1205_v59  ;;  %v1207_v28 = vunpack.i.h.bf16 %v1205_v59 }
  0xd3   : > { %v1210_v60 = vpop.permute.xlu1 %1209 }
  0xd4   : > { %v1211_v25 = vunpack.i.l.bf16 %v1210_v60  ;;  %v1212_v33 = vunpack.i.h.bf16 %v1210_v60 }
  0xd7   : > { %v1600_v62 = vpop.permute.xlu1 %1219 }
  0xd8   : > { %v494_v46 = vpop.permute.xlu0 %493  ;;  %v1221_v43 = vunpack.i.l.bf16 %v1600_v62 }
  0xdb   : > { %v1604_v1 = vpop.permute.xlu1 %1229 }
  0xdc   : > { %v1598_v61 = vpop.permute.xlu0 %1214 }
  0xdd   : > { %v1216_v36 = vunpack.i.l.bf16 %v1598_v61 }
  0xdf   : > { %v1608_v5 = vpop.permute.xlu1 %1239 }
  0xe0   : > { %v1602_v63 = vpop.permute.xlu0 %1224  ;;  %v1241_v15 = vunpack.i.l.bf16 %v1608_v5 }
  0xe4   : > { %v1606_v2 = vpop.permute.xlu0 %1234 }
 0x18c   : > { %v566_v47 = vpop.f32.mrf.mxu0 }
 0x18d   : > { %v567_v48 = vadd.f32 %v566_v47, %v494_v46 }
 0x18e   : > { %v568_v0 = vpop.f32.mrf.mxu0 }
 0x18f   : > { %v1523_v49 = vmax.f32 %v567_v48, 0.0  ;;  %v637_v50 = vpop.f32.mrf.mxu1  ;;  %v569_v53 = vadd.f32 %v568_v0, %v494_v46  ;;  %v1222_v0 = vunpack.i.h.bf16 %v1600_v62  ;;  %v1231_v62 = vunpack.i.l.bf16 %v1604_v1 }
 0x190   : > { %v638_v51 = vadd.f32 %v637_v50, %v494_v46 }
 0x191   : > { %740 = vrot.lane.b32.xlu1 %v1523_v49, %s1252_s21  ;;  %718 = vrot.lane.b32.xlu0 %v1523_v49, %s1253_s22  ;;  %v639_v54 = vpop.f32.mrf.mxu1  ;;  %v1555_v55 = vmax.f32 %v569_v53, 0.0 }
 0x192   : > { %v1529_v52 = vmax.f32 %v638_v51, 0.0  ;;  %v640_v56 = vadd.f32 %v639_v54, %v494_v46  ;;  %v1217_v46 = vunpack.i.h.bf16 %v1598_v61 }
 0x194   : > { %v1561_v57 = vmax.f32 %v640_v56, 0.0 }
 0x195   : > { %844 = vrot.lane.b32.xlu1 %v1529_v52, %s1252_s21  ;;  %822 = vrot.lane.b32.xlu0 %v1529_v52, %s1253_s22 }
 0x199   : > { %694 = vrot.lane.b32.xlu1 %v1523_v49, %s1255_s28  ;;  %706 = vrot.lane.b32.xlu0 %v1523_v49, %s1254_s27 }
 0x19d   : > { %798 = vrot.lane.b32.xlu1 %v1529_v52, %s1255_s28  ;;  %810 = vrot.lane.b32.xlu0 %v1529_v52, %s1254_s27 }
 0x1a1   : > { %782 = vrot.lane.b32.xlu1 %v1529_v52, %s1256_s29  ;;  %682 = vrot.lane.b32.xlu0 %v1523_v49, %s1256_s29 }
 0x1a5   : > { %670 = vrot.lane.b32.xlu1 %v1523_v49, %s1257_s30  ;;  %770 = vrot.lane.b32.xlu0 %v1529_v52, %s1257_s30 }
 0x1a9   : > { %836 = vrot.lane.b32.xlu1 %v1529_v52, %s1258_s6  ;;  %732 = vrot.lane.b32.xlu0 %v1523_v49, %s1258_s6 }
 0x1ad   : > { %658 = vrot.lane.b32.xlu1 %v1523_v49, %s1260_s7  ;;  %742 = vrot.lane.b32.xlu0 %v1555_v55, %s1252_s21 }
 0x1b1   : > { %720 = vrot.lane.b32.xlu1 %v1555_v55, %s1253_s22  ;;  %846 = vrot.lane.b32.xlu0 %v1561_v57, %s1252_s21 }
 0x1b5   : > { %824 = vrot.lane.b32.xlu1 %v1561_v57, %s1253_s22  ;;  %696 = vrot.lane.b32.xlu0 %v1555_v55, %s1255_s28 }
 0x1b9   : > { %708 = vrot.lane.b32.xlu1 %v1555_v55, %s1254_s27  ;;  %800 = vrot.lane.b32.xlu0 %v1561_v57, %s1255_s28 }
 0x1bd   : > { %812 = vrot.lane.b32.xlu1 %v1561_v57, %s1254_s27  ;;  %784 = vrot.lane.b32.xlu0 %v1561_v57, %s1256_s29 }
 0x1c1   : > { %684 = vrot.lane.b32.xlu1 %v1555_v55, %s1256_s29  ;;  %672 = vrot.lane.b32.xlu0 %v1555_v55, %s1257_s30 }
 0x1c5   : > { %772 = vrot.lane.b32.xlu1 %v1561_v57, %s1257_s30  ;;  %838 = vrot.lane.b32.xlu0 %v1561_v57, %s1258_s6 }
 0x1c9   : > { %734 = vrot.lane.b32.xlu1 %v1555_v55, %s1258_s6  ;;  %660 = vrot.lane.b32.xlu0 %v1555_v55, %s1260_s7 }
 0x1cd   : > { %760 = vrot.lane.b32.xlu1 %v1561_v57, %s1260_s7  ;;  %758 = vrot.lane.b32.xlu0 %v1529_v52, %s1260_s7 }
 0x1d1   : > { %858 = vperm.xlu0 %1202, %v855_v58   ;;  %v1226_v58 = vunpack.i.l.bf16 %v1602_v63 }
 0x203   : > { %v741_v6 = vpop.permute.xlu1 %740  ;;  %v719_v7 = vpop.permute.xlu0 %718 }
 0x207   : > { %v845_v8 = vpop.permute.xlu1 %844  ;;  %v823_v3 = vpop.permute.xlu0 %822 }
 0x20b   : > { %v695_v9 = vpop.permute.xlu1 %694  ;;  %v707_v4 = vpop.permute.xlu0 %706 }
 0x20f   : > { %v799_v10 = vpop.permute.xlu1 %798  ;;  %v811_v11 = vpop.permute.xlu0 %810 }
 0x213   : > { %v1610_v12 = vpop.permute.xlu1 %782  ;;  %v1612_v13 = vpop.permute.xlu0 %682 }
 0x217   : > { %v1614_v14 = vpop.permute.xlu1 %670  ;;  %v1616_v16 = vpop.permute.xlu0 %770 }
 0x21b   : > { %v1618_v17 = vpop.permute.xlu1 %836  ;;  %v1620_v19 = vpop.permute.xlu0 %732 }
 0x21f   : > { %v1622_v20 = vpop.permute.xlu1 %658  ;;  %v743_v21 = vpop.permute.xlu0 %742 }
 0x220   : > { %v747_v29 = vsel %vm380_vm3, %v743_v21, %v1211_v25  ;;  %v746_v30 = vsel %vm380_vm3, %v741_v6, %v743_v21  ;;  %v686_v6 = vsel %vm315_vm8, %v1226_v58, %v1612_v13 }
 0x223   : > { %v721_v23 = vpop.permute.xlu1 %720  ;;  %v847_v24 = vpop.permute.xlu0 %846 }
 0x224   : > { %v724_v26 = vsel %vm356_vm0, %v719_v7, %v721_v23  ;;  %v725_v27 = vsel %vm356_vm0, %v721_v23, %v1206_v22  ;;  %v851_v37 = vsel %vm380_vm3, %v847_v24, %v1212_v33  ;;  %v850_v38 = vsel %vm380_vm3, %v845_v8, %v847_v24 }
 0x225   : > { %1112 = vmatprep.subr.msk.mxu0 %vm1412_vm1, %v725_v27  ;;  %v1242_v22 = vunpack.i.h.bf16 %v1608_v5  ;;  %v662_v23 = vsel %vm289_vm11, %v1241_v15, %v1622_v20 }
 0x226   : > { %1113 = vmatpush1.msk.msra.mxu0 %vm1416_vm2, %v724_v26 }
 0x227   : > { %v825_v31 = vpop.permute.xlu1 %824  ;;  %880 = vmatprep.subr.mxu0 %v747_v29  ;;  %v697_v32 = vpop.permute.xlu0 %696 }
 0x228   : > { %v828_v34 = vsel %vm356_vm0, %v823_v3, %v825_v31  ;;  %v829_v35 = vsel %vm356_vm0, %v825_v31, %v1207_v28  ;;  %881 = vmatpush1.msra.mxu0 %v746_v30  ;;  %v701_v47 = vsel %vm330_vm7, %v697_v32, %v1221_v43  ;;  %v700_v48 = vsel %vm330_vm7, %v695_v9, %v697_v32 }
 0x229   : > { %1125 = vmatprep.subr.msk.mxu1 %vm1412_vm1, %v829_v35  ;;  %v674_v9 = vsel %vm302_vm9, %v1231_v62, %v1614_v14 }
 0x22a   : > { %1126 = vmatpush1.msk.msra.mxu1 %vm1416_vm2, %v828_v34 }
 0x22b   : > { %v709_v39 = vpop.permute.xlu1 %708  ;;  %951 = vmatprep.subr.mxu1 %v851_v37  ;;  %v801_v41 = vpop.permute.xlu0 %800 }
 0x22c   : > { %v712_v44 = vsel %vm343_vm4, %v707_v4, %v709_v39  ;;  %v713_v45 = vsel %vm343_vm4, %v709_v39, %v1216_v36  ;;  %952 = vmatpush1.msra.mxu1 %v850_v38  ;;  %v805_v56 = vsel %vm330_vm7, %v801_v41, %v1222_v0  ;;  %v804_v59 = vsel %vm330_vm7, %v799_v10, %v801_v41 }
 0x22d   : > { %1114 = vmatprep.subr.msk.mxu0 %vm1436_vm5, %v713_v45 }
 0x22e   : > { %1115 = vmatpush1.msk.msra.mxu0 %vm1441_vm6, %v712_v44 }
 0x22f   : > { %v813_v50 = vpop.permute.xlu1 %812  ;;  %1116 = vmatprep.subr.msk.mxu0 %vm1412_vm1, %v701_v47  ;;  %v785_v51 = vpop.permute.xlu0 %784 }
 0x230   : > { %v816_v53 = vsel %vm343_vm4, %v811_v11, %v813_v50  ;;  %v817_v54 = vsel %vm343_vm4, %v813_v50, %v1217_v46  ;;  %1117 = vmatpush1.msk.msra.mxu0 %vm1416_vm2, %v700_v48  ;;  %v787_v7 = vsel %vm315_vm8, %v1610_v12, %v785_v51 }
 0x231   : > { %886 = vmatprep.subr.mxu0 %v1555_v55  ;;  %1127 = vmatprep.subr.msk.mxu1 %vm1436_vm5, %v817_v54 }
 0x232   : > { %887 = vmatpush1.msra.mxu0 %v1523_v49  ;;  %1128 = vmatpush1.msk.msra.mxu1 %vm1441_vm6, %v816_v53  ;;  %v1227_v49 = vunpack.i.h.bf16 %v1602_v63  ;;  %v1232_v63 = vunpack.i.h.bf16 %v1604_v1 }
 0x233   : > { %v685_v60 = vpop.permute.xlu1 %684  ;;  %1129 = vmatprep.subr.msk.mxu1 %vm1412_vm1, %v805_v56  ;;  %v673_v61 = vpop.permute.xlu0 %672 }
 0x234   : > { %v687_v55 = vsel %vm315_vm8, %v1612_v13, %v685_v60  ;;  %1130 = vmatpush1.msk.msra.mxu1 %vm1416_vm2, %v804_v59  ;;  %v675_v8 = vsel %vm302_vm9, %v1614_v14, %v673_v61  ;;  %v786_v3 = vsel %vm315_vm8, %v1227_v49, %v1610_v12  ;;  %v774_v1 = vsel %vm302_vm9, %v1232_v63, %v1616_v16 }
 0x235   : > { %1118 = vmatprep.subr.msk.mxu0 %vm1436_vm5, %v687_v55  ;;  %957 = vmatprep.subr.mxu1 %v1561_v57  ;;  %v1236_v12 = vunpack.i.l.bf16 %v1606_v2 }
 0x236   : > { %1119 = vmatpush1.msk.msra.mxu0 %vm1441_vm6, %v686_v6  ;;  %958 = vmatpush1.msra.mxu1 %v1529_v52  ;;  %v1237_v52 = vunpack.i.h.bf16 %v1606_v2 }
 0x237   : > { %v773_v57 = vpop.permute.xlu1 %772  ;;  %1120 = vmatprep.subr.msk.mxu0 %vm1412_vm1, %v675_v8  ;;  %1131 = vmatprep.subr.msk.mxu1 %vm1436_vm5, %v787_v7  ;;  %v839_v4 = vpop.permute.xlu0 %838  ;;  %v736_v18 = vsel %vm369_vm10, %v1236_v12, %v1620_v19 }
 0x238   : > { %v775_v10 = vsel %vm302_vm9, %v1616_v16, %v773_v57  ;;  %1121 = vmatpush1.msk.msra.mxu0 %vm1416_vm2, %v674_v9  ;;  %1132 = vmatpush1.msk.msra.mxu1 %vm1441_vm6, %v786_v3  ;;  %v841_v11 = vsel %vm369_vm10, %v1618_v17, %v839_v4  ;;  %v840_v13 = vsel %vm369_vm10, %v1237_v52, %v1618_v17  ;;  %v854_v17 = vld [vmem:[%s1750_s3] sm:$0xff] }
 0x239   : > { %1133 = vmatprep.subr.msk.mxu1 %vm1412_vm1, %v775_v10 }
 0x23a   : > { %1134 = vmatpush1.msk.msra.mxu1 %vm1416_vm2, %v774_v1 }
 0x23b   : > { %v735_v14 = vpop.permute.xlu1 %734  ;;  %963 = vmatprep.subr.mxu1 %v841_v11  ;;  %v661_v21 = vpop.permute.xlu0 %660 }
 0x23c   : > { %964 = vmatpush1.msra.mxu1 %v840_v13  ;;  %v737_v16 = vsel %vm369_vm10, %v1620_v19, %v735_v14  ;;  %v663_v2 = vsel %vm289_vm11, %v1622_v20, %v661_v21 }
 0x23d   : > { %892 = vmatprep.subr.mxu0 %v737_v16 }
 0x23e   : > { %893 = vmatpush1.msra.mxu0 %v736_v18 }
 0x23f   : > { %v761_v24 = vpop.permute.xlu1 %760  ;;  %1122 = vmatprep.subr.msk.mxu0 %vm1436_vm5, %v663_v2  ;;  %v759_v19 = vpop.permute.xlu0 %758 }
 0x240   : > { %v762_v25 = vsel %vm289_vm11, %v1242_v22, %v759_v19  ;;  %v763_v5 = vsel %vm289_vm11, %v759_v19, %v761_v24  ;;  %1123 = vmatpush1.msk.msra.mxu0 %vm1441_vm6, %v662_v23 }
 0x241   : > { %1124 = vmatmul.mubr.msk.f32.vlgmr.msra.gmra.mxu0 %vm496_vm12, %v854_v17  ;;  %1135 = vmatprep.subr.msk.mxu1 %vm1436_vm5, %v763_v5 }
 0x242   : > { %1136 = vmatpush1.msk.msra.mxu1 %vm1441_vm6, %v762_v25 }
 0x243   : > { %1137 = vmatmul.mubr.msk.f32.vlgmr.msra.gmra.mxu1 %vm496_vm12, %v854_v17 }
 0x24c   : > { %v859_v20 = vpop.permute.xlu0 %858 }
 0x301   : > { %v930_v26 = vpop.f32.mrf.mxu0 }
 0x302   : > { %v931_v27 = vadd.f32 %v930_v26, %v859_v20 }
 0x303   : > { %v932_v28 = vpop.f32.mrf.mxu0  ;;  %v1001_v29 = vpop.f32.mrf.mxu1 }
 0x304   : > { %v1006_v30 = vmax.f32 %v931_v27, 0.0  ;;  %v933_v31 = vadd.f32 %v932_v28, %v859_v20  ;;  %v1002_v32 = vadd.f32 %v1001_v29, %v859_v20 }
 0x305   : > { %v1003_v40 = vpop.f32.mrf.mxu1 }
 0x306   : > { %1010 = vst [vmem:[%s231_s19] sm:$0xff] %v1006_v30  ;;  %v1007_v33 = vmax.f32 %v933_v31, 0.0  ;;  %v1008_v42 = vmax.f32 %v1002_v32, 0.0  ;;  %v1004_v34 = vadd.f32 %v1003_v40, %v859_v20 }
 0x308   : > { %1011 = vst [vmem:[%s231_s19 + $0x8] sm:$0xff] %v1007_v33  ;;  %1138 = vst [vmem:[%s231_s19 + $0x10] sm:$0xff] %v1008_v42  ;;  %v1009_v35 = vmax.f32 %v1004_v34, 0.0 }
 0x30a   : > { %1139 = vst [vmem:[%s231_s19 + $0x18] sm:$0xff] %v1009_v35 }
 0x30b PF: > { %s15_s18 = sadd.s32 1, %s1249_s18  }
 0x30c   : > { %p12_p4 = scmp.ge.s32.totalorder %s15_s18, 4  }
 0x30e   :  { %14 = sbr.rel (!%p12_p4) target bundleno = 1 (0x1), region = 72 }

</bundles_post_ra>
